<compile_context>
chip_gen: v6e
topology: v6e:2x2x1
jax: 0.10.0
libtpu: 0.0.40
codegen_flags: <defaults>
</compile_context>

<pallas_src>
import functools

import jax
import jax.numpy as jnp
from jax.experimental import pallas as pl
from jax.experimental.pallas import tpu as pltpu

LEAKY_SLOPE = 0.3
BN_EPS = 1e-5


def resblock_kernel(h_dim, w_dim, c_dim,
                    x_ref, w1_ref, g1_ref, be1_ref,
                    w2_ref, g2_ref, be2_ref, o_ref):
  """Fused ResBlock2d forward on a lane-dense (N*H, W*C) layout.

  x_ref       : (M, L)      activations, M = N*H rows, L = W*C lanes (C fastest), f32
  w*_ref      : (3, L, L)   block-Toeplitz conv weights (one (L,L) block per dy tap), bf16
  g*/be*_ref  : (1, L)      BN gamma / beta, tiled per lane, f32
  o_ref       : (M, L)      output (lane-dense store), f32
  """
  M, L = x_ref.shape
  x2 = x_ref[...]                                          # (M, L) f32

  row = jax.lax.broadcasted_iota(jnp.int32, (M, L), 0)
  top = (row % h_dim) == 0                  # h == 0   : no valid row above in this image
  bot = (row % h_dim) == (h_dim - 1)        # h == H-1 : no valid row below in this image

  # Channel-group averaging matrix built in-kernel (no (L,L) f32 DMA from HBM):
  # qn[i, j] = 1/(N*H*W) if lane i and lane j carry the same channel, else 0.
  li = jax.lax.broadcasted_iota(jnp.int32, (L, L), 0)
  lj = jax.lax.broadcasted_iota(jnp.int32, (L, L), 1)
  qn = jnp.where((li % c_dim) == (lj % c_dim),
                 1.0 / float(M * w_dim), 0.0).astype(jnp.float32)

  def conv3x3(y, w_ref):
    # dy halo: sublane rolls + per-image boundary masks (masks also zero the wrap rows).
    up = jnp.where(top, 0.0, jnp.roll(y, 1, axis=0)).astype(jnp.bfloat16)
    dn = jnp.where(bot, 0.0, jnp.roll(y, -1, axis=0)).astype(jnp.bfloat16)
    yb = y.astype(jnp.bfloat16)
    # Three K = L bf16 MXU dots accumulated in f32; the dx shifts and the W-edge zero
    # padding are folded into the block-Toeplitz weights.  Conv bias omitted: it is
    # exactly cancelled by the batch-stat BN mean subtraction that follows.
    acc = jnp.dot(yb, w_ref[1], preferred_element_type=jnp.float32)
    acc += jnp.dot(up, w_ref[0], preferred_element_type=jnp.float32)
    acc += jnp.dot(dn, w_ref[2], preferred_element_type=jnp.float32)
    return acc

  def batchnorm(y, g_ref, be_ref):
    # Training-mode BN, single pass in f32: per-channel E[y], E[y^2] via one matmul
    # against the channel-group averaging matrix (which also broadcasts back to lanes).
    s = jnp.concatenate([jnp.sum(y, axis=0, keepdims=True),
                         jnp.sum(y * y, axis=0, keepdims=True)], axis=0)   # (2, L) f32
    ms = jnp.dot(s, qn, preferred_element_type=jnp.float32)                # (2, L)
    mean = ms[0:1, :]
    var = ms[1:2, :] - mean * mean                                         # biased
    inv = jax.lax.rsqrt(var + BN_EPS) * g_ref[...]
    return y * inv + (be_ref[...] - mean * inv)

  def lrelu(v):
    return jnp.where(v >= 0, v, LEAKY_SLOPE * v)

  h1 = lrelu(batchnorm(conv3x3(x2, w1_ref), g1_ref, be1_ref))
  h2 = batchnorm(conv3x3(h1, w2_ref), g2_ref, be2_ref)
  o_ref[...] = lrelu(h2 + x2)          # identity shortcut (stride == 1)


def prepare_resblock_params(params, height, width):
  """Build kernel-ready weights ONCE per weight set (hoisted off the forward path)."""
  del height
  w1, b1, g1, be1, w2, b2, g2, be2 = params
  del b1, b2  # Conv biases are mathematical no-ops under training-mode BN.
  assert w1.shape[0] == w1.shape[1], "stride=1 ResBlock2d needs in_ch == out_ch"
  C = w1.shape[1]
  L = width * C

  def toeplitz(w):
    # PyTorch (Cout, Cin, 3, 3) -> (3, W*Cin, W*Cout) block-Toeplitz weight, bf16.
    # Block ky in {0,1,2} is the dy = ky-1 tap; within a block,
    #   T[ky][w_in*Cin+ci, w_out*Cout+co] = w[co, ci, ky, (w_in - w_out) + 1]  (else 0),
    # folding the three dx taps and the W-edge zero padding into the matmul.
    co, ci = w.shape[0], w.shape[1]
    band = jnp.stack(
        [jnp.eye(width, k=1 - kx, dtype=jnp.float32) for kx in range(3)], axis=0)
    blocks = []
    for ky in range(3):
      wk = w[:, :, ky, :].astype(jnp.float32)                 # (Cout, Cin, 3)
      t = jnp.einsum('xij,ocx->icjo', band, wk)               # (W, Cin, W, Cout)
      blocks.append(t.reshape(width * ci, width * co))
    # bf16 storage: half the HBM bytes and the native MXU operand width.
    return jnp.stack(blocks, axis=0).astype(jnp.bfloat16)     # (3, W*Cin, W*Cout)

  def lanes(v):  # per-channel vector -> per-lane row (1, W*C), C fastest; kept f32
    return jnp.tile(v.astype(jnp.float32), width).reshape(1, L)

  return (toeplitz(w1), lanes(g1), lanes(be1),
          toeplitz(w2), lanes(g2), lanes(be2))


def resblock2d_forward(x_nchw, prepped):
  """Wrapper: NCHW in / NCHW out; kernel works on a lane-dense (N*H, W*C) layout."""
  w1t, g1, be1, w2t, g2, be2 = prepped
  N, C, H, W = x_nchw.shape
  L = W * C
  M = N * H
  assert w1t.shape == (3, L, L), (w1t.shape, (3, L, L))
  # TODO(synk): stride != 1 projection-shortcut branch (conv3/bn3) not implemented.

  # (N, C, H, W) -> (N, H, W, C) -> (N*H, W*C); lane index = w*C + c (C fastest).
  x2 = jnp.transpose(x_nchw, (0, 2, 3, 1)).reshape(M, L).astype(jnp.float32)

  # Whole problem is VMEM-resident at a single grid point (~0.3 MiB total), far under
  # the scoped VMEM limits on v5e/v6e (128 MiB) and v7x (64 MiB).
  vmem = pl.BlockSpec(memory_space=pltpu.MemorySpace.VMEM)
  out2 = pl.pallas_call(
      functools.partial(resblock_kernel, H, W, C),
      out_shape=jax.ShapeDtypeStruct((M, L), jnp.float32),
      in_specs=[vmem] * 7,
      out_specs=vmem,
  )(x2, w1t, g1, be1, w2t, g2, be2)

  return jnp.transpose(out2.reshape(N, H, W, C), (0, 3, 1, 2))


def reference_forward(x, params):
  """Pure-JAX f32 reference mirroring the PyTorch forward (training-mode BN)."""
  w1, b1, g1, be1, w2, b2, g2, be2 = params

  def conv(x, w, b):
    y = jax.lax.conv_general_dilated(
        x, w, window_strides=(1, 1), padding=((1, 1), (1, 1)),
        dimension_numbers=('NCHW', 'OIHW', 'NCHW'))
    return y + b[None, :, None, None]

  def bn(x, g, be):
    mean = jnp.mean(x, axis=(0, 2, 3), keepdims=True)
    var = jnp.mean((x - mean) ** 2, axis=(0, 2, 3), keepdims=True)
    return (x - mean) * jax.lax.rsqrt(var + BN_EPS) * g[None, :, None, None] \
        + be[None, :, None, None]

  lrelu = lambda v: jnp.where(v >= 0, v, LEAKY_SLOPE * v)
  h = lrelu(bn(conv(x, w1, b1), g1, be1))
  h = bn(conv(h, w2, b2), g2, be2)
  return lrelu(h + x)


if __name__ == "__main__":
  N, C, H, W = 2, 8, 16, 16  # in_channels == out_channels == 8, stride = 1; W*C = 128
  key = jax.random.PRNGKey(0)
  keys = jax.random.split(key, 9)

  x = jax.random.normal(keys[0], (N, C, H, W), dtype=jnp.float32)

  w1 = 0.1 * jax.random.normal(keys[1], (C, C, 3, 3), dtype=jnp.float32)
  b1 = 0.05 * jax.random.normal(keys[2], (C,), dtype=jnp.float32)
  w2 = 0.1 * jax.random.normal(keys[3], (C, C, 3, 3), dtype=jnp.float32)
  b2 = 0.05 * jax.random.normal(keys[4], (C,), dtype=jnp.float32)
  g1 = 1.0 + 0.1 * jax.random.normal(keys[5], (C,), dtype=jnp.float32)
  be1 = 0.1 * jax.random.normal(keys[6], (C,), dtype=jnp.float32)
  g2 = 1.0 + 0.1 * jax.random.normal(keys[7], (C,), dtype=jnp.float32)
  be2 = 0.1 * jax.random.normal(keys[8], (C,), dtype=jnp.float32)

  params = (w1, b1, g1, be1, w2, b2, g2, be2)

  # Weight prep (Toeplitz expansion, lane tiling, bf16 cast) is done once and reused.
  prepped = jax.block_until_ready(
      jax.tree_util.tree_map(jax.block_until_ready,
                             prepare_resblock_params(params, H, W)))

  forward = jax.jit(resblock2d_forward)
  out = jax.block_until_ready(forward(x, prepped))

  ref = jax.block_until_ready(reference_forward(x, params))
  assert out.shape == (N, C, H, W), out.shape
  # bf16 MXU operands => ~1e-2-level deviation vs the pure-f32 reference; tolerance
  # relaxed accordingly (review correctness note).
  assert jnp.allclose(out, ref, atol=5e-2, rtol=5e-2), \
      f"max abs diff {jnp.max(jnp.abs(out - ref))}"

  print("KERNEL_OK")
</pallas_src>

<mosaic_0001>
module attributes {stable_mosaic.version = 11 : i64} {
  func.func @resblock_kernel(%arg0: memref<32x128xf32, #tpu.memory_space<vmem>>, %arg1: memref<3x128x128xbf16, #tpu.memory_space<vmem>>, %arg2: memref<1x128xf32, #tpu.memory_space<vmem>>, %arg3: memref<1x128xf32, #tpu.memory_space<vmem>>, %arg4: memref<3x128x128xbf16, #tpu.memory_space<vmem>>, %arg5: memref<1x128xf32, #tpu.memory_space<vmem>>, %arg6: memref<1x128xf32, #tpu.memory_space<vmem>>, %arg7: memref<32x128xf32, #tpu.memory_space<vmem>>) attributes {dimension_semantics = [], scalar_prefetch = 0 : i64, scratch_operands = 0 : i64, tpu.core_type = #tpu.core_type<tc>} {
    %c0 = arith.constant 0 : index
    %c0_0 = arith.constant 0 : index
    %0 = vector.load %arg0[%c0, %c0_0] : memref<32x128xf32, #tpu.memory_space<vmem>>, vector<32x128xf32>
    %1 = tpu.iota {dimensions = array<i32: 0>} : vector<32x128xi32>
    %c16_i32 = arith.constant 16 : i32
    %c0_i32 = arith.constant 0 : i32
    %2 = arith.cmpi eq, %c16_i32, %c0_i32 : i32
    %c1_i32 = arith.constant 1 : i32
    %3 = arith.select %2, %c1_i32, %c16_i32 : i32
    %4 = vector.broadcast %3 : i32 to vector<32x128xi32>
    %5 = arith.remsi %1, %4 : vector<32x128xi32>
    %c0_i32_1 = arith.constant 0 : i32
    %6 = vector.broadcast %c0_i32_1 : i32 to vector<32x128xi32>
    %7 = arith.cmpi ne, %5, %6 : vector<32x128xi32>
    %c0_i32_2 = arith.constant 0 : i32
    %8 = vector.broadcast %c0_i32_2 : i32 to vector<32x128xi32>
    %9 = arith.cmpi slt, %5, %8 : vector<32x128xi32>
    %c0_i32_3 = arith.constant 0 : i32
    %10 = arith.cmpi slt, %3, %c0_i32_3 : i32
    %11 = vector.broadcast %10 : i1 to vector<32x128xi1>
    %12 = vector.broadcast %11 : vector<32x128xi1> to vector<32x128xi1>
    %13 = arith.xori %9, %12 : vector<32x128xi1>
    %14 = arith.andi %13, %7 : vector<32x128xi1>
    %15 = vector.broadcast %3 : i32 to vector<32x128xi32>
    %16 = arith.addi %5, %15 : vector<32x128xi32>
    %17 = arith.select %14, %16, %5 : vector<32x128xi1>, vector<32x128xi32>
    %c0_i32_4 = arith.constant 0 : i32
    %18 = vector.broadcast %c0_i32_4 : i32 to vector<32x128xi32>
    %19 = arith.cmpi eq, %17, %18 : vector<32x128xi32>
    %c16_i32_5 = arith.constant 16 : i32
    %c0_i32_6 = arith.constant 0 : i32
    %20 = arith.cmpi eq, %c16_i32_5, %c0_i32_6 : i32
    %c1_i32_7 = arith.constant 1 : i32
    %21 = arith.select %20, %c1_i32_7, %c16_i32_5 : i32
    %22 = vector.broadcast %21 : i32 to vector<32x128xi32>
    %23 = arith.remsi %1, %22 : vector<32x128xi32>
    %c0_i32_8 = arith.constant 0 : i32
    %24 = vector.broadcast %c0_i32_8 : i32 to vector<32x128xi32>
    %25 = arith.cmpi ne, %23, %24 : vector<32x128xi32>
    %c0_i32_9 = arith.constant 0 : i32
    %26 = vector.broadcast %c0_i32_9 : i32 to vector<32x128xi32>
    %27 = arith.cmpi slt, %23, %26 : vector<32x128xi32>
    %c0_i32_10 = arith.constant 0 : i32
    %28 = arith.cmpi slt, %21, %c0_i32_10 : i32
    %29 = vector.broadcast %28 : i1 to vector<32x128xi1>
    %30 = vector.broadcast %29 : vector<32x128xi1> to vector<32x128xi1>
    %31 = arith.xori %27, %30 : vector<32x128xi1>
    %32 = arith.andi %31, %25 : vector<32x128xi1>
    %33 = vector.broadcast %21 : i32 to vector<32x128xi32>
    %34 = arith.addi %23, %33 : vector<32x128xi32>
    %35 = arith.select %32, %34, %23 : vector<32x128xi1>, vector<32x128xi32>
    %c15_i32 = arith.constant 15 : i32
    %36 = vector.broadcast %c15_i32 : i32 to vector<32x128xi32>
    %37 = arith.cmpi eq, %35, %36 : vector<32x128xi32>
    %38 = tpu.iota {dimensions = array<i32: 0>} : vector<128x128xi32>
    %39 = tpu.iota {dimensions = array<i32: 1>} : vector<128x128xi32>
    %c8_i32 = arith.constant 8 : i32
    %c0_i32_11 = arith.constant 0 : i32
    %40 = arith.cmpi eq, %c8_i32, %c0_i32_11 : i32
    %c1_i32_12 = arith.constant 1 : i32
    %41 = arith.select %40, %c1_i32_12, %c8_i32 : i32
    %42 = vector.broadcast %41 : i32 to vector<128x128xi32>
    %43 = arith.remsi %38, %42 : vector<128x128xi32>
    %c0_i32_13 = arith.constant 0 : i32
    %44 = vector.broadcast %c0_i32_13 : i32 to vector<128x128xi32>
    %45 = arith.cmpi ne, %43, %44 : vector<128x128xi32>
    %c0_i32_14 = arith.constant 0 : i32
    %46 = vector.broadcast %c0_i32_14 : i32 to vector<128x128xi32>
    %47 = arith.cmpi slt, %43, %46 : vector<128x128xi32>
    %c0_i32_15 = arith.constant 0 : i32
    %48 = arith.cmpi slt, %41, %c0_i32_15 : i32
    %49 = vector.broadcast %48 : i1 to vector<128x128xi1>
    %50 = vector.broadcast %49 : vector<128x128xi1> to vector<128x128xi1>
    %51 = arith.xori %47, %50 : vector<128x128xi1>
    %52 = arith.andi %51, %45 : vector<128x128xi1>
    %53 = vector.broadcast %41 : i32 to vector<128x128xi32>
    %54 = arith.addi %43, %53 : vector<128x128xi32>
    %55 = arith.select %52, %54, %43 : vector<128x128xi1>, vector<128x128xi32>
    %c8_i32_16 = arith.constant 8 : i32
    %c0_i32_17 = arith.constant 0 : i32
    %56 = arith.cmpi eq, %c8_i32_16, %c0_i32_17 : i32
    %c1_i32_18 = arith.constant 1 : i32
    %57 = arith.select %56, %c1_i32_18, %c8_i32_16 : i32
    %58 = vector.broadcast %57 : i32 to vector<128x128xi32>
    %59 = arith.remsi %39, %58 : vector<128x128xi32>
    %c0_i32_19 = arith.constant 0 : i32
    %60 = vector.broadcast %c0_i32_19 : i32 to vector<128x128xi32>
    %61 = arith.cmpi ne, %59, %60 : vector<128x128xi32>
    %c0_i32_20 = arith.constant 0 : i32
    %62 = vector.broadcast %c0_i32_20 : i32 to vector<128x128xi32>
    %63 = arith.cmpi slt, %59, %62 : vector<128x128xi32>
    %c0_i32_21 = arith.constant 0 : i32
    %64 = arith.cmpi slt, %57, %c0_i32_21 : i32
    %65 = vector.broadcast %64 : i1 to vector<128x128xi1>
    %66 = vector.broadcast %65 : vector<128x128xi1> to vector<128x128xi1>
    %67 = arith.xori %63, %66 : vector<128x128xi1>
    %68 = arith.andi %67, %61 : vector<128x128xi1>
    %69 = vector.broadcast %57 : i32 to vector<128x128xi32>
    %70 = arith.addi %59, %69 : vector<128x128xi32>
    %71 = arith.select %68, %70, %59 : vector<128x128xi1>, vector<128x128xi32>
    %72 = arith.cmpi eq, %55, %71 : vector<128x128xi32>
    %cst = arith.constant 0.001953125 : f32
    %cst_22 = arith.constant 0.000000e+00 : f32
    %73 = vector.broadcast %cst : f32 to vector<128x128xf32>
    %74 = vector.broadcast %cst_22 : f32 to vector<128x128xf32>
    %75 = arith.select %72, %73, %74 : vector<128x128xi1>, vector<128x128xf32>
    %76 = vector.extract_strided_slice %0 {offsets = [31, 0], sizes = [1, 128], strides = [1, 1]} : vector<32x128xf32> to vector<1x128xf32>
    %77 = vector.extract_strided_slice %0 {offsets = [0, 0], sizes = [31, 128], strides = [1, 1]} : vector<32x128xf32> to vector<31x128xf32>
    %78 = tpu.concatenate %76, %77 in 0 : vector<1x128xf32>, vector<31x128xf32> -> vector<32x128xf32>
    %cst_23 = arith.constant 0.000000e+00 : f32
    %79 = vector.broadcast %cst_23 : f32 to vector<32x128xf32>
    %80 = arith.select %19, %79, %78 : vector<32x128xi1>, vector<32x128xf32>
    %81 = arith.truncf %80 : vector<32x128xf32> to vector<32x128xbf16>
    %82 = vector.extract_strided_slice %0 {offsets = [1, 0], sizes = [31, 128], strides = [1, 1]} : vector<32x128xf32> to vector<31x128xf32>
    %83 = vector.extract_strided_slice %0 {offsets = [0, 0], sizes = [1, 128], strides = [1, 1]} : vector<32x128xf32> to vector<1x128xf32>
    %84 = tpu.concatenate %82, %83 in 0 : vector<31x128xf32>, vector<1x128xf32> -> vector<32x128xf32>
    %cst_24 = arith.constant 0.000000e+00 : f32
    %85 = vector.broadcast %cst_24 : f32 to vector<32x128xf32>
    %86 = arith.select %37, %85, %84 : vector<32x128xi1>, vector<32x128xf32>
    %87 = arith.truncf %86 : vector<32x128xf32> to vector<32x128xbf16>
    %88 = arith.truncf %0 : vector<32x128xf32> to vector<32x128xbf16>
    %c1 = arith.constant 1 : index
    %c0_25 = arith.constant 0 : index
    %c0_26 = arith.constant 0 : index
    %89 = vector.load %arg1[%c1, %c0_25, %c0_26] : memref<3x128x128xbf16, #tpu.memory_space<vmem>>, vector<1x128x128xbf16>
    %90 = vector.shape_cast %89 : vector<1x128x128xbf16> to vector<128x128xbf16>
    %cst_27 = arith.constant dense<0.000000e+00> : vector<32x128xf32>
    %91 = tpu.matmul %88, %90, %cst_27 {dimension_numbers = #tpu.dot_dimension_numbers<[1], [0], [0], [1], [0, 0, 1, 1], [], []>} : vector<32x128xbf16>, vector<128x128xbf16>, vector<32x128xf32> -> vector<32x128xf32>
    %c0_28 = arith.constant 0 : index
    %c0_29 = arith.constant 0 : index
    %c0_30 = arith.constant 0 : index
    %92 = vector.load %arg1[%c0_28, %c0_29, %c0_30] : memref<3x128x128xbf16, #tpu.memory_space<vmem>>, vector<1x128x128xbf16>
    %93 = vector.shape_cast %92 : vector<1x128x128xbf16> to vector<128x128xbf16>
    %cst_31 = arith.constant dense<0.000000e+00> : vector<32x128xf32>
    %94 = tpu.matmul %81, %93, %cst_31 {dimension_numbers = #tpu.dot_dimension_numbers<[1], [0], [0], [1], [0, 0, 1, 1], [], []>} : vector<32x128xbf16>, vector<128x128xbf16>, vector<32x128xf32> -> vector<32x128xf32>
    %95 = arith.addf %91, %94 : vector<32x128xf32>
    %c2 = arith.constant 2 : index
    %c0_32 = arith.constant 0 : index
    %c0_33 = arith.constant 0 : index
    %96 = vector.load %arg1[%c2, %c0_32, %c0_33] : memref<3x128x128xbf16, #tpu.memory_space<vmem>>, vector<1x128x128xbf16>
    %97 = vector.shape_cast %96 : vector<1x128x128xbf16> to vector<128x128xbf16>
    %cst_34 = arith.constant dense<0.000000e+00> : vector<32x128xf32>
    %98 = tpu.matmul %87, %97, %cst_34 {dimension_numbers = #tpu.dot_dimension_numbers<[1], [0], [0], [1], [0, 0, 1, 1], [], []>} : vector<32x128xbf16>, vector<128x128xbf16>, vector<32x128xf32> -> vector<32x128xf32>
    %99 = arith.addf %95, %98 : vector<32x128xf32>
    %cst_35 = arith.constant dense<0.000000e+00> : vector<128xf32>
    %100 = vector.multi_reduction <add>, %99, %cst_35 [0] : vector<32x128xf32> to vector<128xf32>
    %101 = vector.shape_cast %100 : vector<128xf32> to vector<1x128xf32>
    %102 = arith.mulf %99, %99 : vector<32x128xf32>
    %cst_36 = arith.constant dense<0.000000e+00> : vector<128xf32>
    %103 = vector.multi_reduction <add>, %102, %cst_36 [0] : vector<32x128xf32> to vector<128xf32>
    %104 = vector.shape_cast %103 : vector<128xf32> to vector<1x128xf32>
    %105 = tpu.concatenate %101, %104 in 0 : vector<1x128xf32>, vector<1x128xf32> -> vector<2x128xf32>
    %cst_37 = arith.constant dense<0.000000e+00> : vector<2x128xf32>
    %106 = tpu.matmul %105, %75, %cst_37 {dimension_numbers = #tpu.dot_dimension_numbers<[1], [0], [0], [1], [0, 0, 1, 1], [], []>} : vector<2x128xf32>, vector<128x128xf32>, vector<2x128xf32> -> vector<2x128xf32>
    %107 = vector.extract_strided_slice %106 {offsets = [0, 0], sizes = [1, 128], strides = [1, 1]} : vector<2x128xf32> to vector<1x128xf32>
    %108 = vector.extract_strided_slice %106 {offsets = [1, 0], sizes = [1, 128], strides = [1, 1]} : vector<2x128xf32> to vector<1x128xf32>
    %109 = arith.mulf %107, %107 : vector<1x128xf32>
    %110 = arith.subf %108, %109 : vector<1x128xf32>
    %cst_38 = arith.constant 9.99999974E-6 : f32
    %111 = vector.broadcast %cst_38 : f32 to vector<1x128xf32>
    %112 = arith.addf %110, %111 : vector<1x128xf32>
    %113 = math.rsqrt %112 : vector<1x128xf32>
    %c0_39 = arith.constant 0 : index
    %c0_40 = arith.constant 0 : index
    %114 = vector.load %arg2[%c0_39, %c0_40] : memref<1x128xf32, #tpu.memory_space<vmem>>, vector<1x128xf32>
    %115 = arith.mulf %113, %114 : vector<1x128xf32>
    %116 = vector.broadcast %115 : vector<1x128xf32> to vector<32x128xf32>
    %117 = arith.mulf %99, %116 : vector<32x128xf32>
    %c0_41 = arith.constant 0 : index
    %c0_42 = arith.constant 0 : index
    %118 = vector.load %arg3[%c0_41, %c0_42] : memref<1x128xf32, #tpu.memory_space<vmem>>, vector<1x128xf32>
    %119 = arith.mulf %107, %115 : vector<1x128xf32>
    %120 = arith.subf %118, %119 : vector<1x128xf32>
    %121 = vector.broadcast %120 : vector<1x128xf32> to vector<32x128xf32>
    %122 = arith.addf %117, %121 : vector<32x128xf32>
    %cst_43 = arith.constant 0.000000e+00 : f32
    %123 = vector.broadcast %cst_43 : f32 to vector<32x128xf32>
    %124 = arith.cmpf oge, %122, %123 : vector<32x128xf32>
    %cst_44 = arith.constant 3.000000e-01 : f32
    %125 = vector.broadcast %cst_44 : f32 to vector<32x128xf32>
    %126 = arith.mulf %125, %122 : vector<32x128xf32>
    %127 = arith.select %124, %122, %126 : vector<32x128xi1>, vector<32x128xf32>
    %128 = vector.extract_strided_slice %127 {offsets = [31, 0], sizes = [1, 128], strides = [1, 1]} : vector<32x128xf32> to vector<1x128xf32>
    %129 = vector.extract_strided_slice %127 {offsets = [0, 0], sizes = [31, 128], strides = [1, 1]} : vector<32x128xf32> to vector<31x128xf32>
    %130 = tpu.concatenate %128, %129 in 0 : vector<1x128xf32>, vector<31x128xf32> -> vector<32x128xf32>
    %cst_45 = arith.constant 0.000000e+00 : f32
    %131 = vector.broadcast %cst_45 : f32 to vector<32x128xf32>
    %132 = arith.select %19, %131, %130 : vector<32x128xi1>, vector<32x128xf32>
    %133 = arith.truncf %132 : vector<32x128xf32> to vector<32x128xbf16>
    %134 = vector.extract_strided_slice %127 {offsets = [1, 0], sizes = [31, 128], strides = [1, 1]} : vector<32x128xf32> to vector<31x128xf32>
    %135 = vector.extract_strided_slice %127 {offsets = [0, 0], sizes = [1, 128], strides = [1, 1]} : vector<32x128xf32> to vector<1x128xf32>
    %136 = tpu.concatenate %134, %135 in 0 : vector<31x128xf32>, vector<1x128xf32> -> vector<32x128xf32>
    %cst_46 = arith.constant 0.000000e+00 : f32
    %137 = vector.broadcast %cst_46 : f32 to vector<32x128xf32>
    %138 = arith.select %37, %137, %136 : vector<32x128xi1>, vector<32x128xf32>
    %139 = arith.truncf %138 : vector<32x128xf32> to vector<32x128xbf16>
    %140 = arith.truncf %127 : vector<32x128xf32> to vector<32x128xbf16>
    %c1_47 = arith.constant 1 : index
    %c0_48 = arith.constant 0 : index
    %c0_49 = arith.constant 0 : index
    %141 = vector.load %arg4[%c1_47, %c0_48, %c0_49] : memref<3x128x128xbf16, #tpu.memory_space<vmem>>, vector<1x128x128xbf16>
    %142 = vector.shape_cast %141 : vector<1x128x128xbf16> to vector<128x128xbf16>
    %cst_50 = arith.constant dense<0.000000e+00> : vector<32x128xf32>
    %143 = tpu.matmul %140, %142, %cst_50 {dimension_numbers = #tpu.dot_dimension_numbers<[1], [0], [0], [1], [0, 0, 1, 1], [], []>} : vector<32x128xbf16>, vector<128x128xbf16>, vector<32x128xf32> -> vector<32x128xf32>
    %c0_51 = arith.constant 0 : index
    %c0_52 = arith.constant 0 : index
    %c0_53 = arith.constant 0 : index
    %144 = vector.load %arg4[%c0_51, %c0_52, %c0_53] : memref<3x128x128xbf16, #tpu.memory_space<vmem>>, vector<1x128x128xbf16>
    %145 = vector.shape_cast %144 : vector<1x128x128xbf16> to vector<128x128xbf16>
    %cst_54 = arith.constant dense<0.000000e+00> : vector<32x128xf32>
    %146 = tpu.matmul %133, %145, %cst_54 {dimension_numbers = #tpu.dot_dimension_numbers<[1], [0], [0], [1], [0, 0, 1, 1], [], []>} : vector<32x128xbf16>, vector<128x128xbf16>, vector<32x128xf32> -> vector<32x128xf32>
    %147 = arith.addf %143, %146 : vector<32x128xf32>
    %c2_55 = arith.constant 2 : index
    %c0_56 = arith.constant 0 : index
    %c0_57 = arith.constant 0 : index
    %148 = vector.load %arg4[%c2_55, %c0_56, %c0_57] : memref<3x128x128xbf16, #tpu.memory_space<vmem>>, vector<1x128x128xbf16>
    %149 = vector.shape_cast %148 : vector<1x128x128xbf16> to vector<128x128xbf16>
    %cst_58 = arith.constant dense<0.000000e+00> : vector<32x128xf32>
    %150 = tpu.matmul %139, %149, %cst_58 {dimension_numbers = #tpu.dot_dimension_numbers<[1], [0], [0], [1], [0, 0, 1, 1], [], []>} : vector<32x128xbf16>, vector<128x128xbf16>, vector<32x128xf32> -> vector<32x128xf32>
    %151 = arith.addf %147, %150 : vector<32x128xf32>
    %cst_59 = arith.constant dense<0.000000e+00> : vector<128xf32>
    %152 = vector.multi_reduction <add>, %151, %cst_59 [0] : vector<32x128xf32> to vector<128xf32>
    %153 = vector.shape_cast %152 : vector<128xf32> to vector<1x128xf32>
    %154 = arith.mulf %151, %151 : vector<32x128xf32>
    %cst_60 = arith.constant dense<0.000000e+00> : vector<128xf32>
    %155 = vector.multi_reduction <add>, %154, %cst_60 [0] : vector<32x128xf32> to vector<128xf32>
    %156 = vector.shape_cast %155 : vector<128xf32> to vector<1x128xf32>
    %157 = tpu.concatenate %153, %156 in 0 : vector<1x128xf32>, vector<1x128xf32> -> vector<2x128xf32>
    %cst_61 = arith.constant dense<0.000000e+00> : vector<2x128xf32>
    %158 = tpu.matmul %157, %75, %cst_61 {dimension_numbers = #tpu.dot_dimension_numbers<[1], [0], [0], [1], [0, 0, 1, 1], [], []>} : vector<2x128xf32>, vector<128x128xf32>, vector<2x128xf32> -> vector<2x128xf32>
    %159 = vector.extract_strided_slice %158 {offsets = [0, 0], sizes = [1, 128], strides = [1, 1]} : vector<2x128xf32> to vector<1x128xf32>
    %160 = vector.extract_strided_slice %158 {offsets = [1, 0], sizes = [1, 128], strides = [1, 1]} : vector<2x128xf32> to vector<1x128xf32>
    %161 = arith.mulf %159, %159 : vector<1x128xf32>
    %162 = arith.subf %160, %161 : vector<1x128xf32>
    %cst_62 = arith.constant 9.99999974E-6 : f32
    %163 = vector.broadcast %cst_62 : f32 to vector<1x128xf32>
    %164 = arith.addf %162, %163 : vector<1x128xf32>
    %165 = math.rsqrt %164 : vector<1x128xf32>
    %c0_63 = arith.constant 0 : index
    %c0_64 = arith.constant 0 : index
    %166 = vector.load %arg5[%c0_63, %c0_64] : memref<1x128xf32, #tpu.memory_space<vmem>>, vector<1x128xf32>
    %167 = arith.mulf %165, %166 : vector<1x128xf32>
    %168 = vector.broadcast %167 : vector<1x128xf32> to vector<32x128xf32>
    %169 = arith.mulf %151, %168 : vector<32x128xf32>
    %c0_65 = arith.constant 0 : index
    %c0_66 = arith.constant 0 : index
    %170 = vector.load %arg6[%c0_65, %c0_66] : memref<1x128xf32, #tpu.memory_space<vmem>>, vector<1x128xf32>
    %171 = arith.mulf %159, %167 : vector<1x128xf32>
    %172 = arith.subf %170, %171 : vector<1x128xf32>
    %173 = vector.broadcast %172 : vector<1x128xf32> to vector<32x128xf32>
    %174 = arith.addf %169, %173 : vector<32x128xf32>
    %175 = arith.addf %174, %0 : vector<32x128xf32>
    %cst_67 = arith.constant 0.000000e+00 : f32
    %176 = vector.broadcast %cst_67 : f32 to vector<32x128xf32>
    %177 = arith.cmpf oge, %175, %176 : vector<32x128xf32>
    %cst_68 = arith.constant 3.000000e-01 : f32
    %178 = vector.broadcast %cst_68 : f32 to vector<32x128xf32>
    %179 = arith.mulf %178, %175 : vector<32x128xf32>
    %180 = arith.select %177, %175, %179 : vector<32x128xi1>, vector<32x128xf32>
    %c0_69 = arith.constant 0 : index
    %c0_70 = arith.constant 0 : index
    %181 = vector.load %arg7[%c0_69, %c0_70] : memref<32x128xf32, #tpu.memory_space<vmem>>, vector<32x128xf32>
    tpu.vector_store %arg7[%c0_69, %c0_70], %180 {strides = array<i32>} : memref<32x128xf32, #tpu.memory_space<vmem>>, vector<32x128xf32>,
    return
  }
}

</mosaic_0001>

<bundles_post_ra>
// kernel: resblock2d_forward.1
= control target key start
LH: loop header
LB: loop body
LE: loop exit
PB: predicated region body
PF: predicated region fallthrough
CT: control target
= control target key end

     0   :  { %v31_v5 = vlaneseq  ;;  %vm2567_vm0 = vcmask 1040384   ;;  %vm1947_vm2 = vmmov 1   ;;  %vm2566_vm4 = vcmask 1046528   ;;  %s2558_s1 = inlined_call_operand.vmem [shape: bf16[3,128,128], index: 1, kind: input, shape index: {}]   ;;  %s2559_s0 = inlined_call_operand.vmem [shape: f32[32,128], index: 0, kind: input, shape index: {}]   ;;  %s2560_s4 = inlined_call_operand.vmem [shape: bf16[3,128,128], index: 4, kind: input, shape index: {}]   ;;  %s2561_s2 = inlined_call_operand.vmem [shape: f32[1,128], index: 2, kind: input, shape index: {}]   ;;  %s2562_s3 = inlined_call_operand.vmem [shape: f32[1,128], index: 3, kind: input, shape index: {}]   ;;  %s2563_s5 = inlined_call_operand.vmem [shape: f32[1,128], index: 5, kind: input, shape index: {}]   ;;  %s2564_s6 = inlined_call_operand.vmem [shape: f32[1,128], index: 6, kind: input, shape index: {}]   ;;  %s2565_s7 = inlined_call_operand.vmem [shape: f32[32,128], index: 7, kind: output, shape index: {}]  }
   0x1   :  { %v1892_v0 = vld [vmem:[%s2558_s1 + $0x38] sm:$0xff]   ;;  %v1894_v2 = vld [vmem:[%s2558_s1 + $0x30] sm:$0xff]   ;;  %v1896_v4 = vld [vmem:[%s2558_s1 + $0x28] sm:$0xff]   ;;  %v2585_v62 = vmov 0 }
   0x2   :  { %v1893_v1 = vld [vmem:[%s2558_s1 + $0x78] sm:$0xff]   ;;  %1698 = vmatprep.subr.bf16.mxu0 %v1892_v0  ;;  %v1895_v3 = vld [vmem:[%s2558_s1 + $0x70] sm:$0xff]   ;;  %v1897_v6 = vld [vmem:[%s2558_s1 + $0x68] sm:$0xff]   ;;  %v2013_v8 = vshrl.u32 %v31_v5, 7 }
   0x3   :  { %1718 = vmatprep.subr.bf16.mxu1 %v1893_v1  ;;  %1699 = vmatpush3.bf16.msra.mxu0 %v1892_v0  ;;  %v1898_v7 = vld [vmem:[%s2558_s1 + $0x20] sm:$0xff]   ;;  %v1900_v10 = vld [vmem:[%s2558_s1 + $0x18] sm:$0xff]   ;;  %v1902_v13 = vld [vmem:[%s2558_s1 + $0x10] sm:$0xff]   ;;  %v105_v0 = vand.u32 127, %v31_v5 }
   0x4   :  { %1719 = vmatpush3.bf16.msra.mxu1 %v1893_v1  ;;  %1700 = vmatprep.subr.bf16.mxu0 %v1894_v2  ;;  %v1899_v9 = vld [vmem:[%s2558_s1 + $0x60] sm:$0xff]   ;;  %v40_v11 = vand.u32 15, %v2013_v8  ;;  %v1901_v12 = vld [vmem:[%s2558_s1 + $0x58] sm:$0xff]   ;;  %v28_v15 = vld [vmem:[%s2559_s0 + $0x8] sm:$0xff]  ;;  %v2051_v23 = vadd.s32 16, %v2013_v8  ;;  %v2072_v31 = vadd.s32 8, %v2013_v8 }
   0x5   :  { %1720 = vmatprep.subr.bf16.mxu1 %v1895_v3  ;;  %v2031_v14 = vld [vmem:[%s2559_s0] sm:$0xff]  ;;  %v2039_v16 = vld [vmem:[%s2559_s0 + $0x18] sm:$0xff]  ;;  %v1903_v17 = vld [vmem:[%s2558_s1 + $0x50] sm:$0xff]   ;;  %v350_v20 = vrot.slane %v28_v15, 7  ;;  %v368_v36 = vrot.slane %v28_v15, 1  ;;  %v2126_v55 = vadd.s32 24, %v2013_v8 }
   0x6   :  { %vm1600_vm1 = vcmp.ne.s32.totalorder %v40_v11, 0  ;;  %v343_v18 = vrot.slane %v2039_v16, 7  ;;  %v349_v19 = vrot.slane %v2031_v14, 7  ;;  %v1904_v21 = vld [vmem:[%s2558_s1 + $0x8] sm:$0xff]   ;;  %v386_v22 = vpack.c.bf16 %v28_v15, %v2031_v14  ;;  %v2063_v28 = vld [vmem:[%s2559_s0 + $0x10] sm:$0xff]  ;;  %v1906_v32 = vld [vmem:[%s2558_s1] sm:$0xff]  }
   0x7   :  { %1701 = vmatpush3.bf16.msra.mxu0 %v1894_v2  ;;  %vm2056_vm3 = vmpackc.low %vm1947_vm2, %vm1600_vm1  ;;  %v1905_v29 = vld [vmem:[%s2558_s1 + $0x48] sm:$0xff]   ;;  %v54_v30 = vand.u32 15, %v2051_v23  ;;  %v352_v33 = vrot.slane %v2063_v28, 7  ;;  %v1907_v34 = vld [vmem:[%s2558_s1 + $0x40] sm:$0xff]   ;;  %v367_v35 = vrot.slane %v2031_v14, 1  ;;  %v370_v37 = vrot.slane %v2063_v28, 1 }
   0x8   :  { %1721 = vmatpush3.bf16.msra.mxu1 %v1895_v3  ;;  %1702 = vmatprep.subr.bf16.mxu0 %v1896_v4  ;;  %v351_v24 = vsel %vm2567_vm0, %v349_v19, %v350_v20  ;;  %v359_v25 = vsel %vm2567_vm0, %v343_v18, %v349_v19  ;;  %v47_v38 = vand.u32 15, %v2072_v31  ;;  %v1908_v41 = vld [vmem:[%s2558_s1 + $0xb8] sm:$0xff]   ;;  %v387_v46 = vpack.c.bf16 %v2039_v16, %v2063_v28  ;;  %v1909_v47 = vld [vmem:[%s2558_s1 + $0xb0] sm:$0xff]   ;;  %v1910_v50 = vld [vmem:[%s2558_s1 + $0xa8] sm:$0xff]  }
   0x9   :  { %1722 = vmatprep.subr.bf16.mxu1 %v1897_v6  ;;  %v1448_v27 = vpack.c.bf16 %v351_v24, %v359_v25  ;;  %1734 = vmatprep.mubr.bf16.mxu1 %v386_v22  ;;  %v353_v39 = vsel %vm2567_vm0, %v350_v20, %v352_v33  ;;  %v354_v40 = vsel %vm2567_vm0, %v352_v33, %v343_v18  ;;  %vm1601_vm5 = vcmp.ne.s32.totalorder %v54_v30, 0  ;;  %v1911_v51 = vld [vmem:[%s2558_s1 + $0xa0] sm:$0xff]   ;;  %v1912_v52 = vld [vmem:[%s2558_s1 + $0x98] sm:$0xff]   ;;  %v1913_v53 = vld [vmem:[%s2558_s1 + $0x90] sm:$0xff]  }
   0xa   :  { %v369_v42 = vsel %vm2566_vm4, %v367_v35, %v368_v36  ;;  %v371_v43 = vsel %vm2566_vm4, %v368_v36, %v370_v37  ;;  %v1452_v44 = vpack.c.bf16 %v354_v40, %v353_v39  ;;  %vm1602_vm6 = vcmp.ne.s32.totalorder %v47_v38, 15  ;;  %vm2092_vm7 = vmpackc.low %vm1947_vm2, %vm1601_vm5  ;;  %v1914_v54 = vld [vmem:[%s2558_s1 + $0x88] sm:$0xff]   ;;  %v1915_v57 = vld [vmem:[%s2558_s1 + $0x80] sm:$0xff]  }
   0xb   :  { %1703 = vmatpush3.bf16.msra.mxu0 %v1896_v4  ;;  %1714 = vmatprep.mubr.msk.bf16.mxu0 %vm2056_vm3, %v1448_v27  ;;  %v1488_v48 = vpack.c.bf16 %v371_v43, %v369_v42  ;;  %vm2102_vm8 = vmpackc.low %vm1602_vm6, %vm1947_vm2  ;;  %v372_v56 = vrot.slane %v2039_v16, 1  ;;  %v61_v58 = vand.u32 15, %v2126_v55  ;;  %v103_v63 = vadd.s32 120, %v2013_v8  ;;  %v1934_v26 = vld [vmem:[%s2560_s4 + $0xa8] sm:$0xff]   ;;  %v1935_v45 = vld [vmem:[%s2560_s4 + $0xa0] sm:$0xff]  }
   0xc   :  { %1723 = vmatpush3.bf16.msra.mxu1 %v1897_v6  ;;  %1704 = vmatprep.subr.bf16.mxu0 %v1898_v7  ;;  %v1948_v1 = vmov 0.0   ;;  %v2145_v3 = vand.u32 7, %v105_v0  ;;  %v1949_v6 = vmov 0.001953125   ;;  %v102_v5 = vadd.s32 112, %v2013_v8  ;;  %v1936_v49 = vld [vmem:[%s2560_s4 + $0x98] sm:$0xff]   ;;  %v1937_v4 = vld [vmem:[%s2560_s4 + $0x90] sm:$0xff]  }
   0xd   :  { %1724 = vmatprep.subr.bf16.mxu1 %v1899_v9  ;;  %v373_v59 = vsel %vm2566_vm4, %v370_v37, %v372_v56  ;;  %v379_v60 = vsel %vm2566_vm4, %v372_v56, %v367_v35  ;;  %vm1603_vm9 = vcmp.ne.s32.totalorder %v61_v58, 15  ;;  %v215_v2 = vand.u32 7, %v103_v63 }
   0xe   :  { %v1492_v61 = vpack.c.bf16 %v379_v60, %v373_v59  ;;  %vm2136_vm10 = vmpackc.low %vm1603_vm9, %vm1947_vm2  ;;  %v99_v15 = vadd.s32 88, %v2013_v8  ;;  %v98_v18 = vadd.s32 80, %v2013_v8  ;;  %v96_v25 = vadd.s32 64, %v2013_v8 }
   0xf   :  { %1705 = vmatpush3.bf16.msra.mxu0 %v1898_v7  ;;  %v2586_v62 = vsel %vm2136_vm10, 4294967295, %v2585_v62  ;;  %vm2148_vm11 = vcmp.eq.s32.totalorder %v215_v2, %v2145_v3  ;;  %v208_v7 = vand.u32 7, %v102_v5  ;;  %v95_v30 = vadd.s32 56, %v2013_v8 }
  0x10   :  { %1725 = vmatpush3.bf16.msra.mxu1 %v1899_v9  ;;  %1706 = vmatprep.subr.bf16.mxu0 %v1900_v10  ;;  %v101_v9 = vadd.s32 104, %v2013_v8  ;;  %v180_v20 = vand.u32 7, %v98_v18  ;;  %v2603_v35 = vmov 0  ;;  %v93_v37 = vadd.s32 40, %v2013_v8 }
  0x11   :  { %1726 = vmatprep.subr.bf16.mxu1 %v1901_v12  ;;  %vm2159_vm12 = vcmp.eq.s32.totalorder %v208_v7, %v2145_v3  ;;  %v159_v33 = vand.u32 7, %v95_v30  ;;  %v2605_v38 = vmov 0  ;;  %v92_v40 = vadd.s32 32, %v2013_v8 }
  0x12   :  { %v201_v11 = vand.u32 7, %v101_v9  ;;  %vm2199_vm1 = vcmp.eq.s32.totalorder %v180_v20, %v2145_v3  ;;  %v145_v39 = vand.u32 7, %v93_v37  ;;  %v2607_v42 = vmov 0 }
  0x13   :  { %1707 = vmatpush3.bf16.msra.mxu0 %v1900_v10  ;;  %vm2229_vm6 = vcmp.eq.s32.totalorder %v159_v33, %v2145_v3  ;;  %v138_v43 = vand.u32 7, %v92_v40  ;;  %vm2570_vm0 = vmmov 0   ;;  %v1938_v10 = vld [vmem:[%s2560_s4 + $0x88] sm:$0xff]  }
  0x14   :  { %1727 = vmatpush3.bf16.msra.mxu1 %v1901_v12  ;;  %1708 = vmatprep.subr.bf16.mxu0 %v1902_v13  ;;  %v100_v12 = vadd.s32 96, %v2013_v8  ;;  %vm2169_vm13 = vcmp.eq.s32.totalorder %v201_v11, %v2145_v3  ;;  %v2604_v35 = vsel %vm2229_vm6, 4294967295, %v2603_v35  ;;  %vm2250_vm4 = vcmp.eq.s32.totalorder %v145_v39, %v2145_v3 }
  0x15   :  { %1728 = vmatprep.subr.bf16.mxu1 %v1903_v17  ;;  %v2608_v42 = vsel %vm2250_vm4, 4294967295, %v2607_v42 }
  0x16   :  { %v194_v14 = vand.u32 7, %v100_v12 }
  0x17   :  { %1709 = vmatpush3.bf16.msra.mxu0 %v1902_v13  ;;  %v1939_v13 = vld [vmem:[%s2560_s4 + $0x80] sm:$0xff]  }
  0x18   :  { %1729 = vmatpush3.bf16.msra.mxu1 %v1903_v17  ;;  %1710 = vmatprep.subr.bf16.mxu0 %v1904_v21  ;;  %vm2179_vm14 = vcmp.eq.s32.totalorder %v194_v14, %v2145_v3  ;;  %v187_v17 = vand.u32 7, %v99_v15 }
  0x19   :  { %1730 = vmatprep.subr.bf16.mxu1 %v1905_v29 }
  0x1a   :  { %vm2189_vm15 = vcmp.eq.s32.totalorder %v187_v17, %v2145_v3 }
  0x1b   :  { %1711 = vmatpush3.bf16.msra.mxu0 %v1904_v21  ;;  %v97_v21 = vadd.s32 72, %v2013_v8 }
  0x1c   :  { %1731 = vmatpush3.bf16.msra.mxu1 %v1905_v29  ;;  %1712 = vmatprep.subr.bf16.mxu0 %v1906_v32  ;;  %v166_v29 = vand.u32 7, %v96_v25 }
  0x1d   :  { %1732 = vmatprep.subr.bf16.mxu1 %v1907_v34  ;;  %v173_v24 = vand.u32 7, %v97_v21 }
  0x1e   :  { %vm2219_vm5 = vcmp.eq.s32.totalorder %v166_v29, %v2145_v3 }
  0x1f   :  { %1713 = vmatpush3.bf16.msra.mxu0 %v1906_v32  ;;  %vm2209_vm2 = vcmp.eq.s32.totalorder %v173_v24, %v2145_v3  ;;  %v2601_v32 = vmov 0 }
  0x20   :  { %1733 = vmatpush3.bf16.msra.mxu1 %v1907_v34  ;;  %1738 = vmatprep.subr.bf16.mxu0 %v1908_v41  ;;  %v2602_v32 = vsel %vm2219_vm5, 4294967295, %v2601_v32  ;;  %v94_v34 = vadd.s32 48, %v2013_v8 }
  0x21   :  { %1758 = vmatprep.subr.mxu1 %v1948_v1 }
  0x22   :  { %1715 = vmatmul.mubr.msk.bf16.vlgmr.msra.gmra.mxu0 %vm2092_vm7, %v1452_v44  ;;  %v152_v36 = vand.u32 7, %v94_v34  ;;  %v124_v44 = vand.u32 7, %v2051_v23  ;;  %v117_v23 = vand.u32 7, %v2072_v31  ;;  %v2615_v31 = vmov 0 }
  0x23   :  { %1735 = vmatmul.mubr.bf16.vlgmr.msra.gmra.mxu1 %v387_v46  ;;  %1739 = vmatpush3.bf16.msra.mxu0 %v1908_v41  ;;  %v131_v41 = vand.u32 7, %v2126_v55  ;;  %v2609_v46 = vmov 0 }
  0x24   :  { %1740 = vmatprep.subr.bf16.mxu0 %v1909_v47  ;;  %1754 = vmatprep.mubr.msk.bf16.mxu0 %vm2102_vm8, %v1488_v48  ;;  %vm2239_vm9 = vcmp.eq.s32.totalorder %v152_v36, %v2145_v3  ;;  %v2613_v48 = vmov 0 }
  0x25   :  { %1759 = vmatpush3.msk.msra.mxu1 %vm2148_vm11, %v1949_v6  ;;  %v2606_v38 = vsel %vm2239_vm9, 4294967295, %v2605_v38  ;;  %1790 = vmatprep.mubr.msk.f32.mxu1 %vm2570_vm0, %v1948_v1  ;;  %vm2277_vm0 = vcmp.eq.s32.totalorder %v124_v44, %v2145_v3 }
  0x26   :  { %1760 = vmatprep.subr.mxu1 %v1948_v1  ;;  %v2614_v48 = vsel %vm2277_vm0, 4294967295, %v2613_v48 }
  0x27   :  { %1741 = vmatpush3.bf16.msra.mxu0 %v1909_v47  ;;  %1761 = vmatpush3.msk.msra.mxu1 %vm2159_vm12, %v1949_v6  ;;  %v2611_v47 = vmov 0 }
  0x28   :  { %1742 = vmatprep.subr.bf16.mxu0 %v1910_v50  ;;  %1762 = vmatprep.subr.mxu1 %v1948_v1 }
  0x29   :  { %1763 = vmatpush3.msk.msra.mxu1 %vm2169_vm13, %v1949_v6 }
  0x2a   :  { %1764 = vmatprep.subr.mxu1 %v1948_v1 }
  0x2b   :  { %1743 = vmatpush3.bf16.msra.mxu0 %v1910_v50  ;;  %1765 = vmatpush3.msk.msra.mxu1 %vm2179_vm14, %v1949_v6  ;;  %v110_v50 = vand.u32 7, %v2013_v8 }
  0x2c   :  { %1744 = vmatprep.subr.bf16.mxu0 %v1911_v51  ;;  %1766 = vmatprep.subr.mxu1 %v1948_v1 }
  0x2d   :  { %1767 = vmatpush3.msk.msra.mxu1 %vm2189_vm15, %v1949_v6 }
  0x2e   :  { %1768 = vmatprep.subr.mxu1 %v1948_v1 }
  0x2f   :  { %1745 = vmatpush3.bf16.msra.mxu0 %v1911_v51  ;;  %1769 = vmatpush3.msk.msra.mxu1 %vm2199_vm1, %v1949_v6  ;;  %v2617_v51 = vmov 0 }
  0x30   :  { %1746 = vmatprep.subr.bf16.mxu0 %v1912_v52  ;;  %1770 = vmatprep.subr.mxu1 %v1948_v1 }
  0x31   :  { %1771 = vmatpush3.msk.msra.mxu1 %vm2209_vm2, %v1949_v6 }
  0x32   :  { %1772 = vmatprep.subr.mxu1 %v1948_v1 }
  0x33   :  { %1747 = vmatpush3.bf16.msra.mxu0 %v1912_v52  ;;  %1773 = vmatpush3.msk.msra.mxu1 %vm2219_vm5, %v1949_v6 }
  0x34   :  { %1748 = vmatprep.subr.bf16.mxu0 %v1913_v53  ;;  %1774 = vmatprep.subr.mxu1 %v1948_v1 }
  0x35   :  { %1775 = vmatpush3.msk.msra.mxu1 %vm2229_vm6, %v1949_v6 }
  0x36   :  { %1776 = vmatprep.subr.mxu1 %v1948_v1 }
  0x37   :  { %1749 = vmatpush3.bf16.msra.mxu0 %v1913_v53  ;;  %1777 = vmatpush3.msk.msra.mxu1 %vm2239_vm9, %v1949_v6  ;;  %vm2267_vm9 = vcmp.eq.s32.totalorder %v131_v41, %v2145_v3 }
  0x38   :  { %1750 = vmatprep.subr.bf16.mxu0 %v1914_v54  ;;  %1778 = vmatprep.subr.mxu1 %v1948_v1  ;;  %v2612_v47 = vsel %vm2267_vm9, 4294967295, %v2611_v47 }
  0x39   :  { %1779 = vmatpush3.msk.msra.mxu1 %vm2250_vm4, %v1949_v6  ;;  %vm2287_vm4 = vcmp.eq.s32.totalorder %v117_v23, %v2145_v3 }
  0x3a   :  { %1780 = vmatprep.subr.mxu1 %v1948_v1  ;;  %v2616_v31 = vsel %vm2287_vm4, 4294967295, %v2615_v31 }
  0x3b   :  { %1751 = vmatpush3.bf16.msra.mxu0 %v1914_v54 }
  0x3c   :  { %1752 = vmatprep.subr.bf16.mxu0 %v1915_v57 }
  0x3f   :  { %1753 = vmatpush3.bf16.msra.mxu0 %v1915_v57 }
  0x42   :  { %1755 = vmatmul.mubr.msk.bf16.vlgmr.msra.gmra.mxu0 %vm2136_vm10, %v1492_v61  ;;  %vm2262_vm10 = vcmp.eq.s32.totalorder %v138_v43, %v2145_v3 }
  0x43   :  { %v2610_v46 = vsel %vm2262_vm10, 4294967295, %v2609_v46  ;;  %1781 = vmatpush3.msk.msra.mxu1 %vm2262_vm10, %v1949_v6  ;;  %vm2296_vm10 = vcmp.eq.s32.totalorder %v110_v50, %v2145_v3 }
  0x44   :  { %1782 = vmatprep.subr.mxu1 %v1948_v1  ;;  %v2618_v51 = vsel %vm2296_vm10, 4294967295, %v2617_v51 }
  0x45   :  { %1783 = vmatpush3.msk.msra.mxu1 %vm2267_vm9, %v1949_v6 }
  0x46   :  { %1784 = vmatprep.subr.mxu1 %v1948_v1 }
  0x47   :  { %1785 = vmatpush3.msk.msra.mxu1 %vm2277_vm0, %v1949_v6 }
  0x48   :  { %1786 = vmatprep.subr.mxu1 %v1948_v1 }
  0x49   :  { %1787 = vmatpush3.msk.msra.mxu1 %vm2287_vm4, %v1949_v6 }
  0x4a   :  { %1788 = vmatprep.subr.mxu1 %v1948_v1 }
  0x4b   :  { %1789 = vmatpush3.msk.msra.mxu1 %vm2296_vm10, %v1949_v6  ;;  %vm2619_vm10 = vcmask 1040384  }
  0xe2   :  { %v1716_v52 = vpop.f32.mrf.mxu0 }
  0xe3   :  { %v1736_v53 = vpop.f32.mrf.mxu1 }
  0xe4   :  { %v503_v54 = vpop.f32.mrf.mxu0  ;;  %v609_v2 = vadd.f32 %v1736_v53, %v1716_v52 }
  0xe5   :  { %v600_v55 = vpop.f32.mrf.mxu1 }
  0xe6   :  { %v1717_v56 = vpop.f32.mrf.mxu0  ;;  %v601_v63 = vadd.f32 %v600_v55, %v503_v54  ;;  %v1916_v55 = vld [vmem:[%s2560_s4 + $0x78] sm:$0xff]  }
  0xe7   :  { %v1737_v57 = vpop.f32.mrf.mxu1  ;;  %1813 = vmatprep.subr.bf16.mxu1 %v1916_v55 }
  0xe8   :  { %v506_v58 = vpop.f32.mrf.mxu0  ;;  %v612_v9 = vadd.f32 %v1737_v57, %v1717_v56  ;;  %v1917_v56 = vld [vmem:[%s2560_s4 + $0x38] sm:$0xff]   ;;  %v1918_v57 = vld [vmem:[%s2560_s4 + $0x70] sm:$0xff]  }
  0xe9   :  { %v603_v60 = vpop.f32.mrf.mxu1  ;;  %1793 = vmatprep.subr.bf16.mxu0 %v1917_v56 }
  0xea   :  { %v604_v3 = vadd.f32 %v603_v60, %v506_v58  ;;  %1794 = vmatpush3.bf16.msra.mxu0 %v1917_v56  ;;  %v1919_v58 = vld [vmem:[%s2560_s4 + $0x30] sm:$0xff]   ;;  %v1921_v60 = vld [vmem:[%s2560_s4 + $0x28] sm:$0xff]  }
  0xeb   :  { %1795 = vmatprep.subr.bf16.mxu0 %v1919_v58 }
  0xee   :  { %1796 = vmatpush3.bf16.msra.mxu0 %v1919_v58 }
  0xef   :  { %1797 = vmatprep.subr.bf16.mxu0 %v1921_v60 }
  0xf2   :  { %1798 = vmatpush3.bf16.msra.mxu0 %v1921_v60 }
 0x102   :  { %v1756_v59 = vpop.f32.mrf.mxu0 }
 0x103   :  { %v2309_v11 = vadd.f32 %v1756_v59, %v609_v2  ;;  %v1920_v59 = vld [vmem:[%s2560_s4 + $0x68] sm:$0xff]   ;;  %v1925_v2 = vld [vmem:[%s2560_s4 + $0x18] sm:$0xff]  }
 0x104   :  { %v714_v61 = vpop.f32.mrf.mxu0 }
 0x105   :  { %v2307_v5 = vadd.f32 %v714_v61, %v601_v63  ;;  %v744_v20 = vmul.f32 %v2309_v11, %v2309_v11  ;;  %v1922_v61 = vld [vmem:[%s2560_s4 + $0x60] sm:$0xff]  }
 0x106   :  { %v1757_v0 = vpop.f32.mrf.mxu0  ;;  %v1923_v63 = vld [vmem:[%s2560_s4 + $0x20] sm:$0xff]  }
 0x107   :  { %v742_v14 = vmul.f32 %v2307_v5, %v2307_v5  ;;  %v2315_v15 = vadd.f32 %v1757_v0, %v612_v9  ;;  %1799 = vmatprep.subr.bf16.mxu0 %v1923_v63  ;;  %v1924_v0 = vld [vmem:[%s2560_s4 + $0x58] sm:$0xff]   ;;  %v1928_v9 = vld [vmem:[%s2560_s4 + $0x48] sm:$0xff]  }
 0x108   :  { %v717_v7 = vpop.f32.mrf.mxu0  ;;  %1800 = vmatpush3.bf16.msra.mxu0 %v1923_v63 }
 0x109   :  { %v2311_v12 = vadd.f32 %v717_v7, %v604_v3  ;;  %v745_v25 = vmul.f32 %v2315_v15, %v2315_v15  ;;  %1801 = vmatprep.subr.bf16.mxu0 %v1925_v2  ;;  %v1926_v3 = vld [vmem:[%s2560_s4 + $0x50] sm:$0xff]  }
 0x10a   :  { %v1927_v7 = vld [vmem:[%s2560_s4 + $0x10] sm:$0xff]  }
 0x10b   :  { %v733_v17 = vadd.f32 %v2311_v12, %v2307_v5  ;;  %v743_v18 = vmul.f32 %v2311_v12, %v2311_v12 }
 0x10c   :  { %1802 = vmatpush3.bf16.msra.mxu0 %v1925_v2 }
 0x10d   :  { %v734_v21 = vadd.f32 %v733_v17, %v2309_v11  ;;  %v746_v24 = vadd.f32 %v743_v18, %v742_v14  ;;  %v1929_v14 = vld [vmem:[%s2560_s4 + $0x8] sm:$0xff]   ;;  %1803 = vmatprep.subr.bf16.mxu0 %v1927_v7  ;;  %v1930_v17 = vld [vmem:[%s2560_s4 + $0x40] sm:$0xff]  }
 0x10e   :  { %v1931_v18 = vld [vmem:[%s2560_s4] sm:$0xff]  }
 0x10f   :  { %v735_v29 = vadd.f32 %v734_v21, %v2315_v15  ;;  %v747_v30 = vadd.f32 %v746_v24, %v744_v20  ;;  %v2380_v20 = vld [vmem:[%s2560_s4 + $0xb8] sm:$0xff]  }
 0x110   :  { %1804 = vmatpush3.bf16.msra.mxu0 %v1927_v7 }
 0x111   :  { %v736_v33 = vrot.slane %v735_v29, 4  ;;  %v748_v34 = vadd.f32 %v747_v30, %v745_v25  ;;  %1805 = vmatprep.subr.bf16.mxu0 %v1929_v14 }
 0x113   :  { %v737_v36 = vadd.f32 %v736_v33, %v735_v29  ;;  %v749_v37 = vrot.slane %v748_v34, 4 }
 0x114   :  { %1806 = vmatpush3.bf16.msra.mxu0 %v1929_v14 }
 0x115   :  { %v738_v39 = vrot.slane %v737_v36, 2  ;;  %v750_v40 = vadd.f32 %v749_v37, %v748_v34  ;;  %1807 = vmatprep.subr.bf16.mxu0 %v1931_v18  ;;  %v1510_v34 = vld [vmem:[%s2561_s2] ss:$0 sm:$0xff]  ;;  %v843_v37 = vsub.s32 1, %v2013_v8 }
 0x117   :  { %v739_v41 = vadd.f32 %v738_v39, %v737_v36  ;;  %v751_v43 = vrot.slane %v750_v40, 2 }
 0x118   :  { %1808 = vmatpush3.bf16.msra.mxu0 %v1931_v18 }
 0x119   :  { %v740_v44 = vrot.slane %v739_v41, 1  ;;  %v752_v23 = vadd.f32 %v751_v43, %v750_v40  ;;  %1833 = vmatprep.subr.bf16.mxu0 %v2380_v20  ;;  %v849_v43 = vld [vmem:[%s2562_s3] sm:$0x1] }
 0x11b   :  { %v753_v50 = vrot.slane %v752_v23, 1  ;;  %v741_v52 = vadd.f32 %v740_v44, %v739_v41 }
 0x11d   :  { %v754_v53 = vadd.f32 %v753_v50, %v752_v23  ;;  %v858_v23 = vsub.s32 0, %v2013_v8  ;;  %v1946_v8 = vld [vmem:[%s2559_s0 + $0x18] sm:$0xff] }
 0x11f   :  { %v755_v54 = vsel %vm2619_vm10, %v741_v52, %v754_v53 }
 0x120   :  { %1791 = vmatmul.mubr.f32.vlgmr.msra.gmra.mxu1 %v755_v54 }
 0x121   :  { %1814 = vmatpush3.bf16.msra.mxu1 %v1916_v55 }
 0x122   :  { %1815 = vmatprep.subr.bf16.mxu1 %v1918_v57 }
 0x125   :  { %1816 = vmatpush3.bf16.msra.mxu1 %v1918_v57 }
 0x126   :  { %1817 = vmatprep.subr.bf16.mxu1 %v1920_v59 }
 0x129   :  { %1818 = vmatpush3.bf16.msra.mxu1 %v1920_v59 }
 0x12a   :  { %1819 = vmatprep.subr.bf16.mxu1 %v1922_v61 }
 0x12d   :  { %1820 = vmatpush3.bf16.msra.mxu1 %v1922_v61 }
 0x12e   :  { %1821 = vmatprep.subr.bf16.mxu1 %v1924_v0 }
 0x131   :  { %1822 = vmatpush3.bf16.msra.mxu1 %v1924_v0 }
 0x132   :  { %1823 = vmatprep.subr.bf16.mxu1 %v1926_v3 }
 0x135   :  { %1824 = vmatpush3.bf16.msra.mxu1 %v1926_v3 }
 0x136   :  { %1825 = vmatprep.subr.bf16.mxu1 %v1928_v9 }
 0x139   :  { %1826 = vmatpush3.bf16.msra.mxu1 %v1928_v9 }
 0x13a   :  { %1827 = vmatprep.subr.bf16.mxu1 %v1930_v17 }
 0x13d   :  { %1828 = vmatpush3.bf16.msra.mxu1 %v1930_v17 }
 0x13e   :  { %1853 = vmatprep.subr.mxu1 %v1948_v1 }
 0x1e0   :  { %v822_v21 = vpop.f32.mrf.mxu1 }
 0x1e1   :  { %v826_v24 = vmul.f32 %v822_v21, %v822_v21 }
 0x1e2   :  { %v1792_v25 = vpop.f32.mrf.mxu1 }
 0x1e3   :  { %v828_v29 = vrot.slane %v826_v24, 7 }
 0x1e5   :  { %v830_v30 = vsub.f32 %v822_v21, %v828_v29 }
 0x1e7   :  { %v831_v33 = vadd.f32 1e-05, %v830_v30 }
 0x1e9   :  { %1940 = vrsqrt.f32 %v831_v33 }
 0x1f6   :  { %v1941_v36 = vpop.eup %1940 }
 0x1f7   :  { %v840_v39 = vmul.f32 %v1941_v36, %v1510_v34 }
 0x1f9   :  { %v851_v40 = vrot.slane %v840_v39, 1  ;;  %v844_v41 = vrot.slane %v840_v39, %v843_v37 }
 0x1fb   :  { %v853_v44 = vmul.f32 %v851_v40, %v822_v21  ;;  %v845_v52 = vmul.f32 %v844_v41, %v2307_v5  ;;  %v846_v54 = vmul.f32 %v844_v41, %v2311_v12  ;;  %v847_v55 = vmul.f32 %v844_v41, %v2309_v11 }
 0x1fc   :  { %v848_v56 = vmul.f32 %v844_v41, %v2315_v15 }
 0x1fd   :  { %v854_v50 = vsub.f32 %v849_v43, %v853_v44  ;;  %v1933_v43 = vld [vmem:[%s2560_s4 + $0xb0] sm:$0xff]  }
 0x1ff   :  { %v859_v53 = vrot.slane %v854_v50, %v858_v23 }
 0x201   :  { %v861_v57 = vadd.f32 %v859_v53, %v845_v52  ;;  %v862_v58 = vadd.f32 %v859_v53, %v846_v54  ;;  %v863_v59 = vadd.f32 %v859_v53, %v847_v55  ;;  %v864_v60 = vadd.f32 %v859_v53, %v848_v56 }
 0x203   :  { %vm865_vm10 = vcmp.ge.f32.partialorder %v861_v57, 0.0  ;;  %vm866_vm4 = vcmp.ge.f32.partialorder %v862_v58, 0.0  ;;  %v869_v61 = vmul.f32 0.3, %v861_v57  ;;  %v870_v63 = vmul.f32 0.3, %v862_v58 }
 0x204   :  { %vm867_vm0 = vcmp.ge.f32.partialorder %v863_v59, 0.0  ;;  %vm868_vm9 = vcmp.ge.f32.partialorder %v864_v60, 0.0  ;;  %v871_v5 = vmul.f32 0.3, %v863_v59  ;;  %v872_v0 = vmul.f32 0.3, %v864_v60 }
 0x205   :  { %v2399_v2 = vsel %vm865_vm10, %v861_v57, %v869_v61  ;;  %v874_v3 = vsel %vm866_vm4, %v862_v58, %v870_v63  ;;  %vm2620_vm4 = vcmask 1040384   ;;  %vm2621_vm10 = vcmask 1046528  }
 0x206   :  { %v883_v12 = vrot.slane %v2399_v2, 7  ;;  %v884_v11 = vrot.slane %v874_v3, 7  ;;  %v900_v15 = vrot.slane %v2399_v2, 1  ;;  %v901_v7 = vrot.slane %v874_v3, 1  ;;  %vm2625_vm5 = vmmov %vm2621_vm10 }
 0x207   :  { %v919_v9 = vpack.c.bf16 %v874_v3, %v2399_v2  ;;  %v2404_v14 = vsel %vm867_vm0, %v863_v59, %v871_v5  ;;  %v2406_v17 = vsel %vm868_vm9, %v864_v60, %v872_v0  ;;  %vm2622_vm0 = vmmov %vm2620_vm4 }
 0x208   :  { %v878_v18 = vrot.slane %v2406_v17, 7  ;;  %v886_v21 = vrot.slane %v2404_v14, 7  ;;  %v903_v24 = vrot.slane %v2404_v14, 1  ;;  %v920_v25 = vpack.c.bf16 %v2406_v17, %v2404_v14  ;;  %vm2623_vm9 = vmmov %vm2622_vm0 }
 0x209   :  { %1829 = vmatprep.mubr.bf16.mxu1 %v919_v9  ;;  %v885_v29 = vsel %vm2620_vm4, %v883_v12, %v884_v11  ;;  %v902_v30 = vsel %vm2621_vm10, %v900_v15, %v901_v7  ;;  %vm2624_vm6 = vmmov %vm2622_vm0  ;;  %vm2626_vm4 = vmmov 0   ;;  %v905_v16 = vrot.slane %v2406_v17, 1 }
 0x20a   :  { %v893_v33 = vsel %vm2622_vm0, %v878_v18, %v883_v12  ;;  %v887_v34 = vsel %vm2623_vm9, %v884_v11, %v886_v21  ;;  %v888_v36 = vsel %vm2624_vm6, %v886_v21, %v878_v18  ;;  %v904_v39 = vsel %vm2625_vm5, %v901_v7, %v903_v24  ;;  %1830 = vmatmul.mubr.bf16.vlgmr.msra.gmra.mxu1 %v920_v25  ;;  %vm2639_vm10 = vmmov %vm2622_vm0 }
 0x20b   :  { %v1537_v40 = vpack.c.bf16 %v885_v29, %v893_v33  ;;  %v1541_v41 = vpack.c.bf16 %v888_v36, %v887_v34  ;;  %1854 = vmatpush3.msk.msra.mxu1 %vm2148_vm11, %v1949_v6  ;;  %1885 = vmatprep.mubr.msk.f32.mxu1 %vm2626_vm4, %v1948_v1  ;;  %v1577_v44 = vpack.c.bf16 %v904_v39, %v902_v30 }
 0x20c   :  { %1855 = vmatprep.subr.mxu1 %v1948_v1  ;;  %vm2630_vm11 = vnez %v2608_v42  ;;  %vm2638_vm6 = vnez %v2586_v62 }
 0x20d   :  { %1809 = vmatprep.mubr.msk.bf16.mxu0 %vm2056_vm3, %v1537_v40  ;;  %1856 = vmatpush3.msk.msra.mxu1 %vm2159_vm12, %v1949_v6  ;;  %vm2627_vm3 = vnez %v2602_v32  ;;  %vm2631_vm12 = vnez %v2610_v46 }
 0x20e   :  { %1810 = vmatmul.mubr.msk.bf16.vlgmr.msra.gmra.mxu0 %vm2092_vm7, %v1541_v41  ;;  %1857 = vmatprep.subr.mxu1 %v1948_v1  ;;  %vm2628_vm7 = vnez %v2604_v35 }
 0x20f   :  { %1834 = vmatpush3.bf16.msra.mxu0 %v2380_v20  ;;  %1849 = vmatprep.mubr.msk.bf16.mxu0 %vm2102_vm8, %v1577_v44  ;;  %vm2629_vm8 = vnez %v2606_v38  ;;  %v1599_v44 = vld [vmem:[%s2563_s5] ss:$0 sm:$0xff] }
 0x210   :  { %1835 = vmatprep.subr.bf16.mxu0 %v1933_v43  ;;  %1858 = vmatpush3.msk.msra.mxu1 %vm2169_vm13, %v1949_v6  ;;  %vm2632_vm13 = vnez %v2612_v47 }
 0x211   :  { %1859 = vmatprep.subr.mxu1 %v1948_v1 }
 0x212   :  { %1860 = vmatpush3.msk.msra.mxu1 %vm2179_vm14, %v1949_v6  ;;  %vm2633_vm14 = vnez %v2614_v48 }
 0x213   :  { %1836 = vmatpush3.bf16.msra.mxu0 %v1933_v43  ;;  %1861 = vmatprep.subr.mxu1 %v1948_v1 }
 0x214   :  { %1837 = vmatprep.subr.bf16.mxu0 %v1934_v26  ;;  %1862 = vmatpush3.msk.msra.mxu1 %vm2189_vm15, %v1949_v6  ;;  %vm2634_vm15 = vmmov %vm2625_vm5 }
 0x215   :  { %1863 = vmatprep.subr.mxu1 %v1948_v1  ;;  %v906_v19 = vsel %vm2634_vm15, %v903_v24, %v905_v16 }
 0x216   :  { %1864 = vmatpush3.msk.msra.mxu1 %vm2199_vm1, %v1949_v6  ;;  %vm2635_vm1 = vmmov %vm2625_vm5  ;;  %vm2637_vm5 = vnez %v2618_v51 }
 0x217   :  { %1838 = vmatpush3.bf16.msra.mxu0 %v1934_v26  ;;  %1865 = vmatprep.subr.mxu1 %v1948_v1  ;;  %v912_v22 = vsel %vm2635_vm1, %v905_v16, %v900_v15 }
 0x218   :  { %1839 = vmatprep.subr.bf16.mxu0 %v1935_v45  ;;  %1866 = vmatpush3.msk.msra.mxu1 %vm2209_vm2, %v1949_v6  ;;  %vm2636_vm2 = vnez %v2616_v31  ;;  %v1581_v27 = vpack.c.bf16 %v912_v22, %v906_v19 }
 0x219   :  { %1867 = vmatprep.subr.mxu1 %v1948_v1 }
 0x21a   :  { %1868 = vmatpush3.msk.msra.mxu1 %vm2627_vm3, %v1949_v6 }
 0x21b   :  { %1840 = vmatpush3.bf16.msra.mxu0 %v1935_v45  ;;  %1869 = vmatprep.subr.mxu1 %v1948_v1 }
 0x21c   :  { %1841 = vmatprep.subr.bf16.mxu0 %v1936_v49  ;;  %1870 = vmatpush3.msk.msra.mxu1 %vm2628_vm7, %v1949_v6 }
 0x21d   :  { %1871 = vmatprep.subr.mxu1 %v1948_v1 }
 0x21e   :  { %1872 = vmatpush3.msk.msra.mxu1 %vm2629_vm8, %v1949_v6 }
 0x21f   :  { %1842 = vmatpush3.bf16.msra.mxu0 %v1936_v49  ;;  %1873 = vmatprep.subr.mxu1 %v1948_v1 }
 0x220   :  { %1843 = vmatprep.subr.bf16.mxu0 %v1937_v4  ;;  %1874 = vmatpush3.msk.msra.mxu1 %vm2630_vm11, %v1949_v6 }
 0x221   :  { %1875 = vmatprep.subr.mxu1 %v1948_v1 }
 0x222   :  { %1876 = vmatpush3.msk.msra.mxu1 %vm2631_vm12, %v1949_v6 }
 0x223   :  { %1844 = vmatpush3.bf16.msra.mxu0 %v1937_v4  ;;  %1877 = vmatprep.subr.mxu1 %v1948_v1 }
 0x224   :  { %1845 = vmatprep.subr.bf16.mxu0 %v1938_v10  ;;  %1878 = vmatpush3.msk.msra.mxu1 %vm2632_vm13, %v1949_v6 }
 0x225   :  { %1879 = vmatprep.subr.mxu1 %v1948_v1 }
 0x226   :  { %1880 = vmatpush3.msk.msra.mxu1 %vm2633_vm14, %v1949_v6 }
 0x227   :  { %1846 = vmatpush3.bf16.msra.mxu0 %v1938_v10  ;;  %1881 = vmatprep.subr.mxu1 %v1948_v1  ;;  %v1382_v10 = vld [vmem:[%s2564_s6] sm:$0x1] }
 0x228   :  { %1847 = vmatprep.subr.bf16.mxu0 %v1939_v13  ;;  %1882 = vmatpush3.msk.msra.mxu1 %vm2636_vm2, %v1949_v6 }
 0x229   :  { %1883 = vmatprep.subr.mxu1 %v1948_v1 }
 0x22a   :  { %1884 = vmatpush3.msk.msra.mxu1 %vm2637_vm5, %v1949_v6 }
 0x22b   :  { %1848 = vmatpush3.bf16.msra.mxu0 %v1939_v13 }
 0x22e   :  { %1850 = vmatmul.mubr.msk.bf16.vlgmr.msra.gmra.mxu0 %vm2638_vm6, %v1581_v27 }
 0x2ca   :  { %v1831_v38 = vpop.f32.mrf.mxu1 }
 0x2cc   :  { %v1133_v46 = vpop.f32.mrf.mxu1 }
 0x2ce   :  { %v1811_v32 = vpop.f32.mrf.mxu0  ;;  %v1832_v48 = vpop.f32.mrf.mxu1 }
 0x2cf   :  { %v1142_v53 = vadd.f32 %v1831_v38, %v1811_v32 }
 0x2d0   :  { %v1036_v35 = vpop.f32.mrf.mxu0  ;;  %v1136_v1 = vpop.f32.mrf.mxu1 }
 0x2d1   :  { %v1134_v50 = vadd.f32 %v1133_v46, %v1036_v35 }
 0x2d2   :  { %v1812_v42 = vpop.f32.mrf.mxu0 }
 0x2d3   :  { %v1145_v55 = vadd.f32 %v1832_v48, %v1812_v42 }
 0x2d4   :  { %v1039_v47 = vpop.f32.mrf.mxu0 }
 0x2d5   :  { %v1137_v54 = vadd.f32 %v1136_v1, %v1039_v47 }
 0x2ee   :  { %v1851_v31 = vpop.f32.mrf.mxu0 }
 0x2ef   :  { %v1264_v56 = vadd.f32 %v1851_v31, %v1142_v53  ;;  %v1945_v31 = vld [vmem:[%s2559_s0 + $0x8] sm:$0xff] }
 0x2f0   :  { %v1247_v20 = vpop.f32.mrf.mxu0 }
 0x2f1   :  { %v1262_v51 = vadd.f32 %v1247_v20, %v1134_v50  ;;  %v1277_v61 = vmul.f32 %v1264_v56, %v1264_v56 }
 0x2f2   :  { %v1852_v52 = vpop.f32.mrf.mxu0 }
 0x2f3   :  { %v1275_v57 = vmul.f32 %v1262_v51, %v1262_v51  ;;  %v1265_v58 = vadd.f32 %v1852_v52, %v1145_v55 }
 0x2f4   :  { %v1250_v6 = vpop.f32.mrf.mxu0 }
 0x2f5   :  { %v1263_v62 = vadd.f32 %v1250_v6, %v1137_v54  ;;  %v1278_v0 = vmul.f32 %v1265_v58, %v1265_v58 }
 0x2f7   :  { %v1266_v59 = vadd.f32 %v1263_v62, %v1262_v51  ;;  %v1276_v60 = vmul.f32 %v1263_v62, %v1263_v62 }
 0x2f9   :  { %v1267_v63 = vadd.f32 %v1266_v59, %v1264_v56  ;;  %v1279_v5 = vadd.f32 %v1276_v60, %v1275_v57 }
 0x2fb   :  { %v1268_v2 = vadd.f32 %v1267_v63, %v1265_v58  ;;  %v1280_v3 = vadd.f32 %v1279_v5, %v1277_v61 }
 0x2fd   :  { %v1269_v12 = vrot.slane %v1268_v2, 4  ;;  %v1281_v11 = vadd.f32 %v1280_v3, %v1278_v0 }
 0x2ff   :  { %v1270_v15 = vadd.f32 %v1269_v12, %v1268_v2  ;;  %v1282_v7 = vrot.slane %v1281_v11, 4 }
 0x301   :  { %v1271_v9 = vrot.slane %v1270_v15, 2  ;;  %v1283_v14 = vadd.f32 %v1282_v7, %v1281_v11 }
 0x303   :  { %v1272_v17 = vadd.f32 %v1271_v9, %v1270_v15  ;;  %v1284_v18 = vrot.slane %v1283_v14, 2 }
 0x305   :  { %v1273_v21 = vrot.slane %v1272_v17, 1  ;;  %v1285_v24 = vadd.f32 %v1284_v18, %v1283_v14 }
 0x307   :  { %v1286_v25 = vrot.slane %v1285_v24, 1  ;;  %v1274_v29 = vadd.f32 %v1273_v21, %v1272_v17 }
 0x309   :  { %v1287_v30 = vadd.f32 %v1286_v25, %v1285_v24 }
 0x30b   :  { %v1288_v33 = vsel %vm2639_vm10, %v1274_v29, %v1287_v30 }
 0x30c   :  { %1886 = vmatmul.mubr.f32.vlgmr.msra.gmra.mxu1 %v1288_v33 }
 0x3cc   :  { %v1355_v34 = vpop.f32.mrf.mxu1 }
 0x3cd   :  { %v1359_v36 = vmul.f32 %v1355_v34, %v1355_v34 }
 0x3ce   :  { %v1887_v39 = vpop.f32.mrf.mxu1 }
 0x3cf   :  { %v1361_v40 = vrot.slane %v1359_v36, 7 }
 0x3d1   :  { %v1363_v41 = vsub.f32 %v1355_v34, %v1361_v40 }
 0x3d3   :  { %v1364_v43 = vadd.f32 1e-05, %v1363_v41 }
 0x3d5   :  { %1942 = vrsqrt.f32 %v1364_v43 }
 0x3e2   :  { %v1943_v26 = vpop.eup %1942 }
 0x3e3   :  { %v1373_v45 = vmul.f32 %v1943_v26, %v1599_v44 }
 0x3e5   :  { %v1384_v49 = vrot.slane %v1373_v45, 1  ;;  %v1377_v4 = vrot.slane %v1373_v45, %v843_v37  ;;  %v1944_v37 = vld [vmem:[%s2559_s0] sm:$0xff] }
 0x3e7   :  { %v1386_v13 = vmul.f32 %v1384_v49, %v1355_v34  ;;  %v1378_v19 = vmul.f32 %v1377_v4, %v1262_v51  ;;  %v1379_v22 = vmul.f32 %v1377_v4, %v1263_v62  ;;  %v1380_v27 = vmul.f32 %v1377_v4, %v1264_v56 }
 0x3e8   :  { %v1381_v32 = vmul.f32 %v1377_v4, %v1265_v58 }
 0x3e9   :  { %v1387_v16 = vsub.f32 %v1382_v10, %v1386_v13 }
 0x3eb   :  { %v1392_v35 = vrot.slane %v1387_v16, %v858_v23 }
 0x3ed   :  { %v1394_v38 = vadd.f32 %v1392_v35, %v1378_v19  ;;  %v1395_v42 = vadd.f32 %v1392_v35, %v1379_v22  ;;  %v1396_v46 = vadd.f32 %v1392_v35, %v1380_v27  ;;  %v1397_v47 = vadd.f32 %v1392_v35, %v1381_v32 }
 0x3ef   :  { %v1398_v48 = vadd.f32 %v1944_v37, %v1394_v38  ;;  %v1399_v20 = vadd.f32 %v1945_v31, %v1395_v42  ;;  %v1400_v50 = vadd.f32 %v1396_v46, %v2063_v28  ;;  %v1401_v23 = vadd.f32 %v1946_v8, %v1397_v47 }
 0x3f1   :  { %vm1402_vm0 = vcmp.ge.f32.partialorder %v1398_v48, 0.0  ;;  %vm1403_vm9 = vcmp.ge.f32.partialorder %v1399_v20, 0.0  ;;  %vm1404_vm4 = vcmp.ge.f32.partialorder %v1400_v50, 0.0  ;;  %vm1405_vm3 = vcmp.ge.f32.partialorder %v1401_v23, 0.0 }
 0x3f2   :  { %v1406_v1 = vmul.f32 0.3, %v1398_v48  ;;  %v1407_v52 = vmul.f32 0.3, %v1399_v20  ;;  %v1408_v53 = vmul.f32 0.3, %v1400_v50 }
 0x3f3   :  { %v1409_v54 = vmul.f32 0.3, %v1401_v23 }
 0x3f4   :  { %v1410_v51 = vsel %vm1402_vm0, %v1398_v48, %v1406_v1  ;;  %v1411_v6 = vsel %vm1403_vm9, %v1399_v20, %v1407_v52  ;;  %v1412_v55 = vsel %vm1404_vm4, %v1400_v50, %v1408_v53 }
 0x3f5   :  { %v1413_v56 = vsel %vm1405_vm3, %v1401_v23, %v1409_v54  ;;  %1414 = vst [vmem:[%s2565_s7] sm:$0xff] %v1410_v51  ;;  %1415 = vst [vmem:[%s2565_s7 + $0x8] sm:$0xff] %v1411_v6 }
 0x3f6   :  { %1416 = vst [vmem:[%s2565_s7 + $0x10] sm:$0xff] %v1412_v55  ;;  %1417 = vst [vmem:[%s2565_s7 + $0x18] sm:$0xff] %v1413_v56 }

</bundles_post_ra>
